<compile_context>
chip_gen: v5e
topology: v5e:2x2
jax: 0.10.0
libtpu: 0.0.40
codegen_flags: <defaults>
</compile_context>

<pallas_src>
import jax
import jax.numpy as jnp
from jax import lax
from jax.experimental import pallas as pl
from jax.experimental.pallas import tpu as pltpu


# ----------------------------------------------------------------------------
# Pallas kernel
# ----------------------------------------------------------------------------
def _cnn1d_kernel(x_ref, w_ref, b_ref, o_ref):
    """Depthwise conv1d, K=3, stride 1, zero padding 1 (torch cross-correlation).

    x: (R, L)  w: (R, 3)  b: (R, 1)  ->  o: (R, L),  R = B*C rows.
    out[r, l] = w[r,0]*x[r,l-1] + w[r,1]*x[r,l] + w[r,2]*x[r,l+1] + b[r]
    """
    x = x_ref[...]
    w = w_ref[...]
    b = b_ref[...]
    R, L = x.shape

    zero = jnp.zeros((R, 1), x.dtype)
    x_m1 = jnp.concatenate([zero, x[:, : L - 1]], axis=1)   # x[l-1], zero-padded
    x_p1 = jnp.concatenate([x[:, 1:], zero], axis=1)        # x[l+1], zero-padded

    out = w[:, 0:1] * x_m1 + w[:, 1:2] * x + w[:, 2:3] * x_p1 + b
    o_ref[...] = out.astype(o_ref.dtype)


def cnn1d_pallas(x, weight, bias):
    """x: (B, C, L) f32; weight: (C, 3); bias: (C,). Returns (B, C, L)."""
    B, C, L = x.shape
    x2 = x.reshape(B * C, L)
    w2 = jnp.tile(weight, (B, 1))                 # (B*C, 3): per-row kernel taps
    b2 = jnp.tile(bias.reshape(C, 1), (B, 1))     # (B*C, 1)

    vmem = pl.BlockSpec(memory_space=pltpu.MemorySpace.VMEM)
    out2 = pl.pallas_call(
        _cnn1d_kernel,
        out_shape=jax.ShapeDtypeStruct((B * C, L), x.dtype),
        in_specs=[vmem, vmem, vmem],
        out_specs=vmem,
    )(x2, w2, b2)
    return out2.reshape(B, C, L)


# ----------------------------------------------------------------------------
# Pure-JAX reference (grouped conv == PyTorch's 16 independent Conv1d's)
# ----------------------------------------------------------------------------
def cnn1d_ref(x, weight, bias):
    B, C, L = x.shape
    out = lax.conv_general_dilated(
        x,
        weight.reshape(C, 1, 3),
        window_strides=(1,),
        padding=((1, 1),),
        dimension_numbers=("NCH", "OIH", "NCH"),
        feature_group_count=C,
    )
    return out + bias.reshape(1, C, 1)


# ----------------------------------------------------------------------------
if __name__ == "__main__":
    batch, num_features, length = 2, 16, 16

    key = jax.random.PRNGKey(0)
    kx, kw, kb = jax.random.split(key, 3)
    x = jax.random.normal(kx, (batch, num_features, length), jnp.float32)
    # PyTorch Conv1d init range: U(-sqrt(1/(in_ch*K)), +sqrt(1/(in_ch*K)))
    bound = (1.0 / 3.0) ** 0.5
    weight = jax.random.uniform(kw, (num_features, 3), jnp.float32, -bound, bound)
    bias = jax.random.uniform(kb, (num_features,), jnp.float32, -bound, bound)

    out = cnn1d_pallas(x, weight, bias)
    out = jax.block_until_ready(out)

    ref = cnn1d_ref(x, weight, bias)
    assert out.shape == (batch, num_features, length), out.shape
    assert bool(jnp.all(jnp.isfinite(out)))
    assert jnp.allclose(out, ref, rtol=1e-4, atol=1e-4), (out, ref)

    print("KERNEL_OK")
</pallas_src>

<mosaic_0001>
module attributes {stable_mosaic.version = 11 : i64} {
  func.func @_cnn1d_kernel(%arg0: memref<32x16xf32, #tpu.memory_space<vmem>>, %arg1: memref<32x3xf32, #tpu.memory_space<vmem>>, %arg2: memref<32x1xf32, #tpu.memory_space<vmem>>, %arg3: memref<32x16xf32, #tpu.memory_space<vmem>>) attributes {dimension_semantics = [], scalar_prefetch = 0 : i64, scratch_operands = 0 : i64, tpu.core_type = #tpu.core_type<tc>} {
    %c0 = arith.constant 0 : index
    %c0_0 = arith.constant 0 : index
    %0 = vector.load %arg0[%c0, %c0_0] : memref<32x16xf32, #tpu.memory_space<vmem>>, vector<32x16xf32>
    %c0_1 = arith.constant 0 : index
    %c0_2 = arith.constant 0 : index
    %1 = vector.load %arg1[%c0_1, %c0_2] : memref<32x3xf32, #tpu.memory_space<vmem>>, vector<32x3xf32>
    %c0_3 = arith.constant 0 : index
    %c0_4 = arith.constant 0 : index
    %2 = vector.load %arg2[%c0_3, %c0_4] : memref<32x1xf32, #tpu.memory_space<vmem>>, vector<32x1xf32>
    %cst = arith.constant 0.000000e+00 : f32
    %3 = vector.broadcast %cst : f32 to vector<32x1xf32>
    %4 = vector.extract_strided_slice %0 {offsets = [0, 0], sizes = [32, 15], strides = [1, 1]} : vector<32x16xf32> to vector<32x15xf32>
    %5 = tpu.concatenate %3, %4 in 1 : vector<32x1xf32>, vector<32x15xf32> -> vector<32x16xf32>
    %6 = vector.extract_strided_slice %0 {offsets = [0, 1], sizes = [32, 15], strides = [1, 1]} : vector<32x16xf32> to vector<32x15xf32>
    %7 = tpu.concatenate %6, %3 in 1 : vector<32x15xf32>, vector<32x1xf32> -> vector<32x16xf32>
    %8 = vector.extract_strided_slice %1 {offsets = [0, 0], sizes = [32, 1], strides = [1, 1]} : vector<32x3xf32> to vector<32x1xf32>
    %9 = vector.broadcast %8 : vector<32x1xf32> to vector<32x16xf32>
    %10 = arith.mulf %9, %5 : vector<32x16xf32>
    %11 = vector.extract_strided_slice %1 {offsets = [0, 1], sizes = [32, 1], strides = [1, 1]} : vector<32x3xf32> to vector<32x1xf32>
    %12 = vector.broadcast %11 : vector<32x1xf32> to vector<32x16xf32>
    %13 = arith.mulf %12, %0 : vector<32x16xf32>
    %14 = arith.addf %10, %13 : vector<32x16xf32>
    %15 = vector.extract_strided_slice %1 {offsets = [0, 2], sizes = [32, 1], strides = [1, 1]} : vector<32x3xf32> to vector<32x1xf32>
    %16 = vector.broadcast %15 : vector<32x1xf32> to vector<32x16xf32>
    %17 = arith.mulf %16, %7 : vector<32x16xf32>
    %18 = arith.addf %14, %17 : vector<32x16xf32>
    %19 = vector.broadcast %2 : vector<32x1xf32> to vector<32x16xf32>
    %20 = arith.addf %18, %19 : vector<32x16xf32>
    %c0_5 = arith.constant 0 : index
    %c0_6 = arith.constant 0 : index
    %21 = vector.load %arg3[%c0_5, %c0_6] : memref<32x16xf32, #tpu.memory_space<vmem>>, vector<32x16xf32>
    tpu.vector_store %arg3[%c0_5, %c0_6], %20 {strides = array<i32>} : memref<32x16xf32, #tpu.memory_space<vmem>>, vector<32x16xf32>,
    return
  }
}

</mosaic_0001>

<bundles_post_ra>
// kernel: tpu_custom_call.1
= control target key start
LH: loop header
LB: loop body
LE: loop exit
PB: predicated region body
PF: predicated region fallthrough
CT: control target
= control target key end

     0   :  { %v186_v2 = vmov 0   ;;  %s187_s16 = smov 1   ;;  %s188_s17 = smov 127   ;;  %v189_v9 = vmov 1   ;;  %v190_v10 = vmov 2   ;;  %vm42_vm0 = vcmask 7168   ;;  %s291_s0 = inlined_call_operand.vmem [shape: f32[32,16], index: 0, kind: input, shape index: {}]   ;;  %s292_s1 = inlined_call_operand.vmem [shape: f32[32,3], index: 1, kind: input, shape index: {}]   ;;  %s293_s2 = inlined_call_operand.vmem [shape: f32[32,1], index: 2, kind: input, shape index: {}]   ;;  %s294_s3 = inlined_call_operand.vmem [shape: f32[32,16], index: 3, kind: output, shape index: {}]  }
   0x1   :  { %v214_v0 = vld [vmem:[%s291_s0 + $0x10] sm:$0xff]  ;;  %v219_v1 = vld [vmem:[%s291_s0] sm:$0xff]  ;;  %174 = vset.pattern.permute.xlu2 %v186_v2  ;;  %176 = vset.pattern.permute.xlu1 %v186_v2  ;;  %v227_v3 = vld [vmem:[%s291_s0 + $0x18] sm:$0xff]  ;;  %vm59_vm1 = vcmask 121856   ;;  %vm160_vm2 = vcmask 130048  }
   0x2   :  { %34 = vrot.lane.b32.xlu1 %v214_v0, %s187_s16  ;;  %47 = vrot.lane.b32.xlu2 %v219_v1, %s188_s17  ;;  %v232_v4 = vld [vmem:[%s291_s0 + $0x8] sm:$0xff]  ;;  %v18_v5 = vld [vmem:[%s292_s1] sm:$0xff] }
   0x3   :  { %30 = vrot.lane.b32.xlu0 %v219_v1, %s187_s16  ;;  %v20_v6 = vld [vmem:[%s292_s1 + $0x10] sm:$0xff]  ;;  %v21_v7 = vld [vmem:[%s292_s1 + $0x18] sm:$0xff]  ;;  %v19_v8 = vld [vmem:[%s292_s1 + $0x8] sm:$0xff] }
   0x4   :  { %175 = vset.pattern.permute.xlu0 %v186_v2  ;;  %v22_v11 = vld [vmem:[%s293_s2] sm:$0xff]  ;;  %v23_v12 = vld [vmem:[%s293_s2 + $0x8] sm:$0xff]  ;;  %v24_v13 = vld [vmem:[%s293_s2 + $0x10] sm:$0xff] }
   0x5   :  { %v25_v14 = vld [vmem:[%s293_s2 + $0x18] sm:$0xff] }
   0xa   :  { %36 = vrot.lane.b32.xlu1 %v227_v3, %s187_s16  ;;  %49 = vrot.lane.b32.xlu2 %v232_v4, %s188_s17 }
   0xb   :  { %32 = vrot.lane.b32.xlu0 %v232_v4, %s187_s16 }
  0x12   :  { %53 = vrot.lane.b32.xlu1 %v227_v3, %s188_s17  ;;  %66 = vperm.xlu2 %174, %v18_v5  }
  0x13   :  { %51 = vrot.lane.b32.xlu0 %v214_v0, %s188_s17 }
  0x1a   :  { %76 = vperm.xlu1 %176, %v20_v6   ;;  %81 = vperm.xlu2 %174, %v21_v7  }
  0x1b   :  { %71 = vperm.xlu0 %175, %v19_v8  }
  0x22   :  { %177 = vset.pattern.permute.xlu1 %v189_v9  ;;  %178 = vset.pattern.permute.xlu2 %v189_v9 }
  0x23   :  { %179 = vset.pattern.permute.xlu0 %v189_v9  ;;  %89 = vperm.xlu1 %177, %v18_v5  }
  0x24   :  { %93 = vperm.xlu2 %178, %v19_v8   ;;  %97 = vperm.xlu0 %179, %v20_v6  }
  0x2b   :  { %101 = vperm.xlu1 %177, %v21_v7  }
  0x2c   :  { %180 = vset.pattern.permute.xlu2 %v190_v10  ;;  %182 = vset.pattern.permute.xlu0 %v190_v10 }
  0x2d   :  { %113 = vperm.xlu2 %180, %v18_v5   ;;  %125 = vperm.xlu0 %182, %v21_v7  }
  0x33   :  { %181 = vset.pattern.permute.xlu1 %v190_v10 }
  0x34   :  { %117 = vperm.xlu1 %181, %v19_v8  }
  0x35   :  { %121 = vperm.xlu2 %180, %v20_v6   ;;  %185 = vset.pattern.permute.xlu0 %v186_v2 }
  0x3c   :  { %183 = vset.pattern.permute.xlu1 %v186_v2 }
  0x3d   :  { %138 = vperm.xlu1 %183, %v22_v11   ;;  %184 = vset.pattern.permute.xlu2 %v186_v2 }
  0x3e   :  { %143 = vperm.xlu2 %184, %v23_v12  }
  0x45   :  { %148 = vperm.xlu1 %183, %v24_v13  }
  0x46   :  { %153 = vperm.xlu2 %184, %v25_v14  }
  0x5c   :  { %v48_v15 = vpop.permute.xlu2 %47 }
  0x5d   :  { %v60_v56 = vsel %vm59_vm1, %v48_v15, 0.0 }
  0x64   :  { %v50_v16 = vpop.permute.xlu2 %49 }
  0x65   :  { %v61_v48 = vsel %vm59_vm1, %v50_v16, 0.0 }
  0x6c   :  { %v67_v17 = vpop.permute.xlu2 %66 }
  0x74   :  { %v35_v18 = vpop.permute.xlu1 %34  ;;  %v82_v19 = vpop.permute.xlu2 %81 }
  0x75   :  { %v31_v20 = vpop.permute.xlu0 %30  ;;  %v45_v61 = vsel %vm42_vm0, 0.0, %v35_v18 }
  0x76   :  { %v43_v47 = vsel %vm42_vm0, 0.0, %v31_v20 }
  0x77   :  { %v84_v53 = vmul.f32 %v67_v17, %v43_v47 }
  0x7c   :  { %v37_v21 = vpop.permute.xlu1 %36 }
  0x7d   :  { %v33_v22 = vpop.permute.xlu0 %32  ;;  %v46_v33 = vsel %vm42_vm0, 0.0, %v37_v21 }
  0x7e   :  { %v94_v23 = vpop.permute.xlu2 %93  ;;  %v87_v35 = vmul.f32 %v82_v19, %v46_v33  ;;  %v44_v39 = vsel %vm42_vm0, 0.0, %v33_v22 }
  0x7f   :  { %v105_v44 = vmul.f32 %v94_v23, %v232_v4 }
  0x84   :  { %v54_v24 = vpop.permute.xlu1 %53 }
  0x85   :  { %v52_v25 = vpop.permute.xlu0 %51  ;;  %v63_v37 = vsel %vm59_vm1, %v54_v24, 0.0 }
  0x86   :  { %v62_v62 = vsel %vm59_vm1, %v52_v25, 0.0 }
  0x87   :  { %v114_v26 = vpop.permute.xlu2 %113 }
  0x88   :  { %v128_v58 = vmul.f32 %v114_v26, %v60_v56 }
  0x8c   :  { %v77_v27 = vpop.permute.xlu1 %76 }
  0x8d   :  { %v72_v28 = vpop.permute.xlu0 %71 }
  0x8e   :  { %v85_v45 = vmul.f32 %v72_v28, %v44_v39 }
  0x8f   :  { %v122_v29 = vpop.permute.xlu2 %121 }
  0x90   :  { %v109_v51 = vadd.f32 %v105_v44, %v85_v45 }
  0x95   :  { %v90_v30 = vpop.permute.xlu1 %89 }
  0x96   :  { %v98_v31 = vpop.permute.xlu0 %97  ;;  %v104_v49 = vmul.f32 %v90_v30, %v219_v1  ;;  %v86_v1 = vmul.f32 %v77_v27, %v45_v61 }
  0x97   :  { %v106_v59 = vmul.f32 %v98_v31, %v214_v0 }
  0x98   :  { %v144_v32 = vpop.permute.xlu2 %143  ;;  %v108_v55 = vadd.f32 %v104_v49, %v84_v53 }
  0x99   :  { %v110_v4 = vadd.f32 %v106_v59, %v86_v1 }
  0x9a   :  { %v132_v60 = vadd.f32 %v128_v58, %v108_v55 }
  0x9d   :  { %v102_v34 = vpop.permute.xlu1 %101 }
  0x9e   :  { %v107_v36 = vmul.f32 %v102_v34, %v227_v3  ;;  %v130_v3 = vmul.f32 %v122_v29, %v62_v62 }
  0x9f   :  { %v126_v38 = vpop.permute.xlu0 %125 }
  0xa0   :  { %v111_v40 = vadd.f32 %v107_v36, %v87_v35  ;;  %v131_v41 = vmul.f32 %v126_v38, %v63_v37  ;;  %v154_v42 = vpop.permute.xlu2 %153  ;;  %v134_v5 = vadd.f32 %v130_v3, %v110_v4 }
  0xa2   :  { %v135_v43 = vadd.f32 %v131_v41, %v111_v40 }
  0xa4   :  { %v159_v46 = vadd.f32 %v154_v42, %v135_v43 }
  0xa6   :  { %164 = vst.msk [vmem:[%s294_s3 + $0x18] sm:$0xff] %vm160_vm2, %v159_v46  ;;  %v118_v50 = vpop.permute.xlu1 %117 }
  0xa7   :  { %v129_v52 = vmul.f32 %v118_v50, %v61_v48 }
  0xa9   :  { %v133_v54 = vadd.f32 %v129_v52, %v109_v51 }
  0xab   :  { %v157_v57 = vadd.f32 %v144_v32, %v133_v54 }
  0xad   :  { %162 = vst.msk [vmem:[%s294_s3 + $0x8] sm:$0xff] %vm160_vm2, %v157_v57 }
  0xaf   :  { %v139_v63 = vpop.permute.xlu1 %138 }
  0xb0   :  { %v156_v2 = vadd.f32 %v139_v63, %v132_v60 }
  0xb2   :  { %161 = vst.msk [vmem:[%s294_s3] sm:$0xff] %vm160_vm2, %v156_v2 }
  0xb7   :  { %v149_v6 = vpop.permute.xlu1 %148 }
  0xb8   :  { %v158_v7 = vadd.f32 %v149_v6, %v134_v5 }
  0xba   :  { %163 = vst.msk [vmem:[%s294_s3 + $0x10] sm:$0xff] %vm160_vm2, %v158_v7 }

</bundles_post_ra>
